<compile_context>
chip_gen: v6e
topology: v6e:2x2x1
jax: 0.10.0
libtpu: 0.0.40
codegen_flags: <defaults>
</compile_context>

<pallas_src>
import numpy as np
import jax
import jax.numpy as jnp
from jax.experimental import pallas as pl
from jax.experimental.pallas import tpu as pltpu

NUM_FLOWS = 4
BATCH = 8
DIM = 32
HALF = DIM // 2
HIDDEN = 32
NUM_CLASSES = 32          # keep in sync with the intended PyTorch num_classes
LOG2PI = float(np.log(2.0 * np.pi))
LOG2 = float(np.log(2.0))

ZS_LANES = NUM_FLOWS * DIM          # 128 lanes: z1 | z2 | z3 | z4 (lane-dense)


def flow_model_kernel(xa_ref, xb_ref, w1_ref, b1_ref, w2_ref, b2_ref,
                      zs_ref, logprob_ref):
    """Whole flow forward on one batch tile, entirely in registers/VMEM.

    xa_ref/xb_ref : (TB, HALF)                the two feature halves of x
    w1_ref        : (HALF, F*HIDDEN) = (16,128)  per-flow layer-1 weights
    b1_ref        : (1,    F*HIDDEN)
    w2_ref        : (HIDDEN, F*DIM)  = (32,128)  per-flow fused (s|t) weights
    b2_ref        : (1,      F*DIM)
    zs_ref        : (TB, F*DIM)      = (TB,128)  [z1 | z2 | z3 | z4]
    logprob_ref   : (TB, 1)
    """
    tb = xa_ref.shape[0]

    xa = xa_ref[...]
    xb = xb_ref[...]
    if xa.dtype != jnp.float32:           # gate the cast; no-op for f32 inputs
        xa = xa.astype(jnp.float32)
        xb = xb.astype(jnp.float32)

    # one unmasked, lane-dense load per weight slab (resident across the grid)
    w1 = w1_ref[...]
    b1 = b1_ref[...]
    w2 = w2_ref[...]
    b2 = b2_ref[...]

    z_parts = []                                             # z1..zF halves
    log_det = jnp.zeros((tb, 1), jnp.float32)

    for i in range(NUM_FLOWS):                               # unrolled at trace time
        cond = xa if (i % 2 == 0) else xb
        trans = xb if (i % 2 == 0) else xa

        # conditioner MLP; per-flow weight blocks are static lane slices
        h = jnp.tanh(
            jnp.dot(cond, w1[:, i * HIDDEN:(i + 1) * HIDDEN],
                    preferred_element_type=jnp.float32)
            + b1[:, i * HIDDEN:(i + 1) * HIDDEN]
        )                                                    # (TB, HIDDEN)

        # fused s/t projection: one MXU push, then static in-vreg lane slices
        st = (
            jnp.dot(h, w2[:, i * DIM:(i + 1) * DIM],
                    preferred_element_type=jnp.float32)
            + b2[:, i * DIM:(i + 1) * DIM]
        )                                                    # (TB, DIM)
        s = jnp.tanh(st[:, :HALF])                           # (TB, HALF)
        t = st[:, HALF:]                                     # (TB, HALF)

        y = trans * jnp.exp(s) + t                           # affine coupling
        if i % 2 == 0:
            xb = y
        else:
            xa = y

        log_det = log_det + jnp.sum(s, axis=1, keepdims=True)
        z_parts.extend([xa, xb])

    # standard Normal prior log-prob; constant term hoisted out of the reduction
    prior_logprob = (
        -0.5 * (jnp.sum(xa * xa, axis=1, keepdims=True)
                + jnp.sum(xb * xb, axis=1, keepdims=True))
        - 0.5 * DIM * LOG2PI
    )
    objective = prior_logprob + log_det
    logprob = -objective / (LOG2 * NUM_CLASSES)              # (TB, 1)

    # exactly one 128-lane unmasked store for z1..zF + a tiny logprob store
    zs_ref[...] = jnp.concatenate(z_parts, axis=1)
    logprob_ref[...] = logprob


def _pick_batch_tile(B):
    """Largest 8-multiple divisor of B <= 1024; force grid >= 2 once B >= 16
    so v7x's two TensorCores both get work (v5e/v6e unaffected)."""
    cap = min(B, 1024)
    if B >= 16:
        cap = min(cap, B // 2)
    for d in range(cap, 0, -1):
        if B % d == 0 and d % 8 == 0:
            return d
    return B          # fall back to one whole-batch tile (tiny / odd batches)


def normalizing_flow_model_forward(x, w1, b1, w2, b2):
    """Wrapper.  x:(B,DIM), w1:(F,HALF,HIDDEN), b1:(F,HIDDEN),
    w2:(F,HIDDEN,DIM), b2:(F,DIM).  Returns (zs list, logprob (B,))."""
    B, D = x.shape
    assert D == DIM

    # split x into halves host-side (free XLA slices)
    xa = x[:, :HALF]
    xb = x[:, HALF:]

    # lane-dense weight slabs (host-side layout plumbing, free)
    w1_slab = jnp.transpose(w1, (1, 0, 2)).reshape(HALF, NUM_FLOWS * HIDDEN)
    b1_slab = b1.reshape(1, NUM_FLOWS * HIDDEN)
    w2_slab = jnp.transpose(w2, (1, 0, 2)).reshape(HIDDEN, NUM_FLOWS * DIM)
    b2_slab = b2.reshape(1, NUM_FLOWS * DIM)

    TB = _pick_batch_tile(B)
    assert B % TB == 0, "BATCH must be a multiple of the batch tile"
    grid = (B // TB,)

    batch_spec = lambda shape: pl.BlockSpec(shape, lambda i: (i, 0))
    whole_spec = lambda shape: pl.BlockSpec(shape, lambda i: (0, 0))

    weight_bytes = 4 * (w1_slab.size + b1_slab.size + w2_slab.size + b2_slab.size)
    cost = pl.CostEstimate(
        flops=2 * B * NUM_FLOWS * (HALF * HIDDEN + HIDDEN * DIM),
        transcendentals=B * NUM_FLOWS * (HIDDEN + 2 * HALF),
        bytes_accessed=4 * (B * DIM + B * ZS_LANES + B) + weight_bytes,
    )

    zs_slab, logprob = pl.pallas_call(
        flow_model_kernel,
        out_shape=(jax.ShapeDtypeStruct((B, ZS_LANES), jnp.float32),
                   jax.ShapeDtypeStruct((B, 1), jnp.float32)),
        grid=grid,
        in_specs=[
            batch_spec((TB, HALF)),                      # xa
            batch_spec((TB, HALF)),                      # xb
            whole_spec((HALF, NUM_FLOWS * HIDDEN)),      # w1 slab
            whole_spec((1, NUM_FLOWS * HIDDEN)),         # b1 slab
            whole_spec((HIDDEN, NUM_FLOWS * DIM)),       # w2 fused slab
            whole_spec((1, NUM_FLOWS * DIM)),            # b2 fused slab
        ],
        out_specs=(batch_spec((TB, ZS_LANES)),           # z1..zF slab
                   batch_spec((TB, 1))),                 # logprob
        compiler_params=pltpu.CompilerParams(
            dimension_semantics=("parallel",)),          # lets v7x use both TCs
        cost_estimate=cost,
    )(xa, xb, w1_slab, b1_slab, w2_slab, b2_slab)

    # zs[0] is just x — return it from the wrapper, no need to store it again
    zs = [x] + [zs_slab[:, i * DIM:(i + 1) * DIM] for i in range(NUM_FLOWS)]
    return zs, logprob[:, 0]


def reference_forward(x, w1, b1, w2, b2):
    """Plain-JAX reference mirroring the PyTorch module semantics."""
    zs = [x]
    log_det = jnp.zeros((x.shape[0],), jnp.float32)
    for i in range(NUM_FLOWS):
        if i % 2 == 0:
            cond, trans = x[:, :HALF], x[:, HALF:]
        else:
            cond, trans = x[:, HALF:], x[:, :HALF]
        h = jnp.tanh(cond @ w1[i] + b1[i])
        st = h @ w2[i] + b2[i]
        s = jnp.tanh(st[:, :HALF])
        t = st[:, HALF:]
        y = trans * jnp.exp(s) + t
        x = jnp.concatenate([cond, y], 1) if i % 2 == 0 else jnp.concatenate([y, cond], 1)
        log_det = log_det + jnp.sum(s, axis=1)
        zs.append(x)
    prior_logprob = jnp.sum(-0.5 * x * x - 0.5 * LOG2PI, axis=1)
    objective = prior_logprob + log_det
    return zs, -objective / (LOG2 * NUM_CLASSES)


if __name__ == "__main__":
    key = jax.random.PRNGKey(0)
    kx, kw1, kb1, kw2, kb2 = jax.random.split(key, 5)

    x = jax.random.normal(kx, (BATCH, DIM), jnp.float32)

    # deterministic synthetic parameters (small scale keeps exp(s) well-behaved)
    w1 = 0.2 * jax.random.normal(kw1, (NUM_FLOWS, HALF, HIDDEN), jnp.float32)
    b1 = 0.1 * jax.random.normal(kb1, (NUM_FLOWS, HIDDEN), jnp.float32)
    w2 = 0.2 * jax.random.normal(kw2, (NUM_FLOWS, HIDDEN, DIM), jnp.float32)
    b2 = 0.1 * jax.random.normal(kb2, (NUM_FLOWS, DIM), jnp.float32)

    zs, logprob = normalizing_flow_model_forward(x, w1, b1, w2, b2)
    jax.block_until_ready(logprob)
    jax.block_until_ready(zs[-1])

    zs_ref, logprob_ref = reference_forward(x, w1, b1, w2, b2)

    ok = np.allclose(np.asarray(logprob), np.asarray(logprob_ref), rtol=1e-4, atol=1e-4)
    for a, b in zip(zs, zs_ref):
        ok = ok and np.allclose(np.asarray(a), np.asarray(b), rtol=1e-4, atol=1e-4)

    assert ok, "Pallas kernel output mismatch vs JAX reference"
    print("KERNEL_OK")
</pallas_src>

<mosaic_0001>
module attributes {stable_mosaic.version = 11 : i64} {
  func.func @flow_model_kernel(%arg0: i32, %arg1: memref<8x16xf32, #tpu.memory_space<vmem>>, %arg2: memref<8x16xf32, #tpu.memory_space<vmem>>, %arg3: memref<16x128xf32, #tpu.memory_space<vmem>>, %arg4: memref<1x128xf32, #tpu.memory_space<vmem>>, %arg5: memref<32x128xf32, #tpu.memory_space<vmem>>, %arg6: memref<1x128xf32, #tpu.memory_space<vmem>>, %arg7: memref<8x128xf32, #tpu.memory_space<vmem>>, %arg8: memref<8x1xf32, #tpu.memory_space<vmem>>) attributes {dimension_semantics = [#tpu.dimension_semantics<parallel>], iteration_bounds = array<i64: 1>, scalar_prefetch = 0 : i64, scratch_operands = 0 : i64, tpu.core_type = #tpu.core_type<tc>, window_params = [{transform_indices = @transform_0, window_bounds = array<i64: 8, 16>}, {transform_indices = @transform_1, window_bounds = array<i64: 8, 16>}, {pipeline_mode = #tpu.pipeline_mode<synchronous>, transform_indices = @transform_2, window_bounds = array<i64: 16, 128>}, {pipeline_mode = #tpu.pipeline_mode<synchronous>, transform_indices = @transform_3, window_bounds = array<i64: 1, 128>}, {pipeline_mode = #tpu.pipeline_mode<synchronous>, transform_indices = @transform_4, window_bounds = array<i64: 32, 128>}, {pipeline_mode = #tpu.pipeline_mode<synchronous>, transform_indices = @transform_5, window_bounds = array<i64: 1, 128>}, {transform_indices = @transform_6, window_bounds = array<i64: 8, 128>}, {transform_indices = @transform_7, window_bounds = array<i64: 8, 1>}]} {
    %c0 = arith.constant 0 : index
    %c0_0 = arith.constant 0 : index
    %0 = vector.load %arg1[%c0, %c0_0] : memref<8x16xf32, #tpu.memory_space<vmem>>, vector<8x16xf32>
    %c0_1 = arith.constant 0 : index
    %c0_2 = arith.constant 0 : index
    %1 = vector.load %arg2[%c0_1, %c0_2] : memref<8x16xf32, #tpu.memory_space<vmem>>, vector<8x16xf32>
    %c0_3 = arith.constant 0 : index
    %c0_4 = arith.constant 0 : index
    %2 = vector.load %arg3[%c0_3, %c0_4] : memref<16x128xf32, #tpu.memory_space<vmem>>, vector<16x128xf32>
    %c0_5 = arith.constant 0 : index
    %c0_6 = arith.constant 0 : index
    %3 = vector.load %arg4[%c0_5, %c0_6] : memref<1x128xf32, #tpu.memory_space<vmem>>, vector<1x128xf32>
    %c0_7 = arith.constant 0 : index
    %c0_8 = arith.constant 0 : index
    %4 = vector.load %arg5[%c0_7, %c0_8] : memref<32x128xf32, #tpu.memory_space<vmem>>, vector<32x128xf32>
    %c0_9 = arith.constant 0 : index
    %c0_10 = arith.constant 0 : index
    %5 = vector.load %arg6[%c0_9, %c0_10] : memref<1x128xf32, #tpu.memory_space<vmem>>, vector<1x128xf32>
    %cst = arith.constant 0.000000e+00 : f32
    %6 = vector.broadcast %cst : f32 to vector<8x1xf32>
    %7 = vector.extract_strided_slice %2 {offsets = [0, 0], sizes = [16, 32], strides = [1, 1]} : vector<16x128xf32> to vector<16x32xf32>
    %cst_11 = arith.constant dense<0.000000e+00> : vector<8x32xf32>
    %8 = tpu.matmul %0, %7, %cst_11 {dimension_numbers = #tpu.dot_dimension_numbers<[1], [0], [0], [1], [0, 0, 1, 1], [], []>} : vector<8x16xf32>, vector<16x32xf32>, vector<8x32xf32> -> vector<8x32xf32>
    %9 = vector.extract_strided_slice %3 {offsets = [0, 0], sizes = [1, 32], strides = [1, 1]} : vector<1x128xf32> to vector<1x32xf32>
    %10 = vector.broadcast %9 : vector<1x32xf32> to vector<8x32xf32>
    %11 = arith.addf %8, %10 : vector<8x32xf32>
    %12 = math.tanh %11 : vector<8x32xf32>
    %13 = vector.extract_strided_slice %4 {offsets = [0, 0], sizes = [32, 32], strides = [1, 1]} : vector<32x128xf32> to vector<32x32xf32>
    %cst_12 = arith.constant dense<0.000000e+00> : vector<8x32xf32>
    %14 = tpu.matmul %12, %13, %cst_12 {dimension_numbers = #tpu.dot_dimension_numbers<[1], [0], [0], [1], [0, 0, 1, 1], [], []>} : vector<8x32xf32>, vector<32x32xf32>, vector<8x32xf32> -> vector<8x32xf32>
    %15 = vector.extract_strided_slice %5 {offsets = [0, 0], sizes = [1, 32], strides = [1, 1]} : vector<1x128xf32> to vector<1x32xf32>
    %16 = vector.broadcast %15 : vector<1x32xf32> to vector<8x32xf32>
    %17 = arith.addf %14, %16 : vector<8x32xf32>
    %18 = vector.extract_strided_slice %17 {offsets = [0, 0], sizes = [8, 16], strides = [1, 1]} : vector<8x32xf32> to vector<8x16xf32>
    %19 = math.tanh %18 : vector<8x16xf32>
    %20 = vector.extract_strided_slice %17 {offsets = [0, 16], sizes = [8, 16], strides = [1, 1]} : vector<8x32xf32> to vector<8x16xf32>
    %21 = math.exp %19 : vector<8x16xf32>
    %22 = arith.mulf %1, %21 : vector<8x16xf32>
    %23 = arith.addf %22, %20 : vector<8x16xf32>
    %cst_13 = arith.constant dense<0.000000e+00> : vector<8xf32>
    %24 = vector.multi_reduction <add>, %19, %cst_13 [1] : vector<8x16xf32> to vector<8xf32>
    %25 = vector.shape_cast %24 : vector<8xf32> to vector<8x1xf32>
    %26 = arith.addf %6, %25 : vector<8x1xf32>
    %27 = vector.extract_strided_slice %2 {offsets = [0, 32], sizes = [16, 32], strides = [1, 1]} : vector<16x128xf32> to vector<16x32xf32>
    %cst_14 = arith.constant dense<0.000000e+00> : vector<8x32xf32>
    %28 = tpu.matmul %23, %27, %cst_14 {dimension_numbers = #tpu.dot_dimension_numbers<[1], [0], [0], [1], [0, 0, 1, 1], [], []>} : vector<8x16xf32>, vector<16x32xf32>, vector<8x32xf32> -> vector<8x32xf32>
    %29 = vector.extract_strided_slice %3 {offsets = [0, 32], sizes = [1, 32], strides = [1, 1]} : vector<1x128xf32> to vector<1x32xf32>
    %30 = vector.broadcast %29 : vector<1x32xf32> to vector<8x32xf32>
    %31 = arith.addf %28, %30 : vector<8x32xf32>
    %32 = math.tanh %31 : vector<8x32xf32>
    %33 = vector.extract_strided_slice %4 {offsets = [0, 32], sizes = [32, 32], strides = [1, 1]} : vector<32x128xf32> to vector<32x32xf32>
    %cst_15 = arith.constant dense<0.000000e+00> : vector<8x32xf32>
    %34 = tpu.matmul %32, %33, %cst_15 {dimension_numbers = #tpu.dot_dimension_numbers<[1], [0], [0], [1], [0, 0, 1, 1], [], []>} : vector<8x32xf32>, vector<32x32xf32>, vector<8x32xf32> -> vector<8x32xf32>
    %35 = vector.extract_strided_slice %5 {offsets = [0, 32], sizes = [1, 32], strides = [1, 1]} : vector<1x128xf32> to vector<1x32xf32>
    %36 = vector.broadcast %35 : vector<1x32xf32> to vector<8x32xf32>
    %37 = arith.addf %34, %36 : vector<8x32xf32>
    %38 = vector.extract_strided_slice %37 {offsets = [0, 0], sizes = [8, 16], strides = [1, 1]} : vector<8x32xf32> to vector<8x16xf32>
    %39 = math.tanh %38 : vector<8x16xf32>
    %40 = vector.extract_strided_slice %37 {offsets = [0, 16], sizes = [8, 16], strides = [1, 1]} : vector<8x32xf32> to vector<8x16xf32>
    %41 = math.exp %39 : vector<8x16xf32>
    %42 = arith.mulf %0, %41 : vector<8x16xf32>
    %43 = arith.addf %42, %40 : vector<8x16xf32>
    %cst_16 = arith.constant dense<0.000000e+00> : vector<8xf32>
    %44 = vector.multi_reduction <add>, %39, %cst_16 [1] : vector<8x16xf32> to vector<8xf32>
    %45 = vector.shape_cast %44 : vector<8xf32> to vector<8x1xf32>
    %46 = arith.addf %26, %45 : vector<8x1xf32>
    %47 = vector.extract_strided_slice %2 {offsets = [0, 64], sizes = [16, 32], strides = [1, 1]} : vector<16x128xf32> to vector<16x32xf32>
    %cst_17 = arith.constant dense<0.000000e+00> : vector<8x32xf32>
    %48 = tpu.matmul %43, %47, %cst_17 {dimension_numbers = #tpu.dot_dimension_numbers<[1], [0], [0], [1], [0, 0, 1, 1], [], []>} : vector<8x16xf32>, vector<16x32xf32>, vector<8x32xf32> -> vector<8x32xf32>
    %49 = vector.extract_strided_slice %3 {offsets = [0, 64], sizes = [1, 32], strides = [1, 1]} : vector<1x128xf32> to vector<1x32xf32>
    %50 = vector.broadcast %49 : vector<1x32xf32> to vector<8x32xf32>
    %51 = arith.addf %48, %50 : vector<8x32xf32>
    %52 = math.tanh %51 : vector<8x32xf32>
    %53 = vector.extract_strided_slice %4 {offsets = [0, 64], sizes = [32, 32], strides = [1, 1]} : vector<32x128xf32> to vector<32x32xf32>
    %cst_18 = arith.constant dense<0.000000e+00> : vector<8x32xf32>
    %54 = tpu.matmul %52, %53, %cst_18 {dimension_numbers = #tpu.dot_dimension_numbers<[1], [0], [0], [1], [0, 0, 1, 1], [], []>} : vector<8x32xf32>, vector<32x32xf32>, vector<8x32xf32> -> vector<8x32xf32>
    %55 = vector.extract_strided_slice %5 {offsets = [0, 64], sizes = [1, 32], strides = [1, 1]} : vector<1x128xf32> to vector<1x32xf32>
    %56 = vector.broadcast %55 : vector<1x32xf32> to vector<8x32xf32>
    %57 = arith.addf %54, %56 : vector<8x32xf32>
    %58 = vector.extract_strided_slice %57 {offsets = [0, 0], sizes = [8, 16], strides = [1, 1]} : vector<8x32xf32> to vector<8x16xf32>
    %59 = math.tanh %58 : vector<8x16xf32>
    %60 = vector.extract_strided_slice %57 {offsets = [0, 16], sizes = [8, 16], strides = [1, 1]} : vector<8x32xf32> to vector<8x16xf32>
    %61 = math.exp %59 : vector<8x16xf32>
    %62 = arith.mulf %23, %61 : vector<8x16xf32>
    %63 = arith.addf %62, %60 : vector<8x16xf32>
    %cst_19 = arith.constant dense<0.000000e+00> : vector<8xf32>
    %64 = vector.multi_reduction <add>, %59, %cst_19 [1] : vector<8x16xf32> to vector<8xf32>
    %65 = vector.shape_cast %64 : vector<8xf32> to vector<8x1xf32>
    %66 = arith.addf %46, %65 : vector<8x1xf32>
    %67 = vector.extract_strided_slice %2 {offsets = [0, 96], sizes = [16, 32], strides = [1, 1]} : vector<16x128xf32> to vector<16x32xf32>
    %cst_20 = arith.constant dense<0.000000e+00> : vector<8x32xf32>
    %68 = tpu.matmul %63, %67, %cst_20 {dimension_numbers = #tpu.dot_dimension_numbers<[1], [0], [0], [1], [0, 0, 1, 1], [], []>} : vector<8x16xf32>, vector<16x32xf32>, vector<8x32xf32> -> vector<8x32xf32>
    %69 = vector.extract_strided_slice %3 {offsets = [0, 96], sizes = [1, 32], strides = [1, 1]} : vector<1x128xf32> to vector<1x32xf32>
    %70 = vector.broadcast %69 : vector<1x32xf32> to vector<8x32xf32>
    %71 = arith.addf %68, %70 : vector<8x32xf32>
    %72 = math.tanh %71 : vector<8x32xf32>
    %73 = vector.extract_strided_slice %4 {offsets = [0, 96], sizes = [32, 32], strides = [1, 1]} : vector<32x128xf32> to vector<32x32xf32>
    %cst_21 = arith.constant dense<0.000000e+00> : vector<8x32xf32>
    %74 = tpu.matmul %72, %73, %cst_21 {dimension_numbers = #tpu.dot_dimension_numbers<[1], [0], [0], [1], [0, 0, 1, 1], [], []>} : vector<8x32xf32>, vector<32x32xf32>, vector<8x32xf32> -> vector<8x32xf32>
    %75 = vector.extract_strided_slice %5 {offsets = [0, 96], sizes = [1, 32], strides = [1, 1]} : vector<1x128xf32> to vector<1x32xf32>
    %76 = vector.broadcast %75 : vector<1x32xf32> to vector<8x32xf32>
    %77 = arith.addf %74, %76 : vector<8x32xf32>
    %78 = vector.extract_strided_slice %77 {offsets = [0, 0], sizes = [8, 16], strides = [1, 1]} : vector<8x32xf32> to vector<8x16xf32>
    %79 = math.tanh %78 : vector<8x16xf32>
    %80 = vector.extract_strided_slice %77 {offsets = [0, 16], sizes = [8, 16], strides = [1, 1]} : vector<8x32xf32> to vector<8x16xf32>
    %81 = math.exp %79 : vector<8x16xf32>
    %82 = arith.mulf %43, %81 : vector<8x16xf32>
    %83 = arith.addf %82, %80 : vector<8x16xf32>
    %cst_22 = arith.constant dense<0.000000e+00> : vector<8xf32>
    %84 = vector.multi_reduction <add>, %79, %cst_22 [1] : vector<8x16xf32> to vector<8xf32>
    %85 = vector.shape_cast %84 : vector<8xf32> to vector<8x1xf32>
    %86 = arith.addf %66, %85 : vector<8x1xf32>
    %87 = arith.mulf %83, %83 : vector<8x16xf32>
    %cst_23 = arith.constant dense<0.000000e+00> : vector<8xf32>
    %88 = vector.multi_reduction <add>, %87, %cst_23 [1] : vector<8x16xf32> to vector<8xf32>
    %89 = vector.shape_cast %88 : vector<8xf32> to vector<8x1xf32>
    %90 = arith.mulf %63, %63 : vector<8x16xf32>
    %cst_24 = arith.constant dense<0.000000e+00> : vector<8xf32>
    %91 = vector.multi_reduction <add>, %90, %cst_24 [1] : vector<8x16xf32> to vector<8xf32>
    %92 = vector.shape_cast %91 : vector<8xf32> to vector<8x1xf32>
    %93 = arith.addf %89, %92 : vector<8x1xf32>
    %cst_25 = arith.constant -5.000000e-01 : f32
    %94 = vector.broadcast %cst_25 : f32 to vector<8x1xf32>
    %95 = arith.mulf %94, %93 : vector<8x1xf32>
    %cst_26 = arith.constant 29.4060326 : f32
    %96 = vector.broadcast %cst_26 : f32 to vector<8x1xf32>
    %97 = arith.subf %95, %96 : vector<8x1xf32>
    %98 = arith.addf %97, %86 : vector<8x1xf32>
    %cst_27 = arith.constant 0.000000e+00 : f32
    %99 = vector.broadcast %cst_27 : f32 to vector<8x1xf32>
    %100 = arith.subf %99, %98 : vector<8x1xf32>
    %cst_28 = arith.constant 22.1807098 : f32
    %101 = vector.broadcast %cst_28 : f32 to vector<8x1xf32>
    %102 = arith.divf %100, %101 : vector<8x1xf32>
    %103 = tpu.concatenate %0, %23, %43, %23, %43, %63, %83, %63 in 1 : vector<8x16xf32>, vector<8x16xf32>, vector<8x16xf32>, vector<8x16xf32>, vector<8x16xf32>, vector<8x16xf32>, vector<8x16xf32>, vector<8x16xf32> -> vector<8x128xf32>
    %c0_29 = arith.constant 0 : index
    %c0_30 = arith.constant 0 : index
    %104 = vector.load %arg7[%c0_29, %c0_30] : memref<8x128xf32, #tpu.memory_space<vmem>>, vector<8x128xf32>
    tpu.vector_store %arg7[%c0_29, %c0_30], %103 {strides = array<i32>} : memref<8x128xf32, #tpu.memory_space<vmem>>, vector<8x128xf32>,
    %c0_31 = arith.constant 0 : index
    %c0_32 = arith.constant 0 : index
    %105 = vector.load %arg8[%c0_31, %c0_32] : memref<8x1xf32, #tpu.memory_space<vmem>>, vector<8x1xf32>
    tpu.vector_store %arg8[%c0_31, %c0_32], %102 {strides = array<i32>} : memref<8x1xf32, #tpu.memory_space<vmem>>, vector<8x1xf32>,
    return
  }
  func.func @transform_0(%arg0: i32) -> (i32, i32) {
    %c0_i32 = arith.constant 0 : i32
    %c0_i32_0 = arith.constant 0 : i32
    return %arg0, %c0_i32 : i32, i32
  }
  func.func @transform_1(%arg0: i32) -> (i32, i32) {
    %c0_i32 = arith.constant 0 : i32
    %c0_i32_0 = arith.constant 0 : i32
    return %arg0, %c0_i32 : i32, i32
  }
  func.func @transform_2(%arg0: i32) -> (i32, i32) {
    %c0_i32 = arith.constant 0 : i32
    %c0_i32_0 = arith.constant 0 : i32
    %c0_i32_1 = arith.constant 0 : i32
    return %c0_i32, %c0_i32_0 : i32, i32
  }
  func.func @transform_3(%arg0: i32) -> (i32, i32) {
    %c0_i32 = arith.constant 0 : i32
    %c0_i32_0 = arith.constant 0 : i32
    %c0_i32_1 = arith.constant 0 : i32
    return %c0_i32, %c0_i32_0 : i32, i32
  }
  func.func @transform_4(%arg0: i32) -> (i32, i32) {
    %c0_i32 = arith.constant 0 : i32
    %c0_i32_0 = arith.constant 0 : i32
    %c0_i32_1 = arith.constant 0 : i32
    return %c0_i32, %c0_i32_0 : i32, i32
  }
  func.func @transform_5(%arg0: i32) -> (i32, i32) {
    %c0_i32 = arith.constant 0 : i32
    %c0_i32_0 = arith.constant 0 : i32
    %c0_i32_1 = arith.constant 0 : i32
    return %c0_i32, %c0_i32_0 : i32, i32
  }
  func.func @transform_6(%arg0: i32) -> (i32, i32) {
    %c0_i32 = arith.constant 0 : i32
    %c0_i32_0 = arith.constant 0 : i32
    return %arg0, %c0_i32 : i32, i32
  }
  func.func @transform_7(%arg0: i32) -> (i32, i32) {
    %c0_i32 = arith.constant 0 : i32
    %c0_i32_0 = arith.constant 0 : i32
    return %arg0, %c0_i32 : i32, i32
  }
}

</mosaic_0001>

<bundles_post_ra>
// kernel: tpu_custom_call.1
= control target key start
LH: loop header
LB: loop body
LE: loop exit
PB: predicated region body
PF: predicated region fallthrough
CT: control target
= control target key end

     0   :  { %13 = vsyncpa [#allocation3], 0  ;;  %s1392_s0 = inlined_call_operand.hbm [shape: f32[8,16], index: 0, kind: input, shape index: {}]   ;;  %s1393_s1 = inlined_call_operand.hbm [shape: f32[8,16], index: 1, kind: input, shape index: {}]   ;;  %s1394_s2 = inlined_call_operand.hbm [shape: f32[16,128], index: 2, kind: input, shape index: {}]   ;;  %s1395_s3 = inlined_call_operand.vmem [shape: f32[1,128], index: 3, kind: input, shape index: {}]   ;;  %s1396_s4 = inlined_call_operand.hbm [shape: f32[32,128], index: 4, kind: input, shape index: {}]   ;;  %s1397_s5 = inlined_call_operand.vmem [shape: f32[1,128], index: 5, kind: input, shape index: {}]   ;;  %s1398_s6 = inlined_call_operand.hbm [shape: f32[8,128], index: 6, kind: output, shape index: {0}]   ;;  %s1399_s7 = inlined_call_operand.vmem [shape: f32[8,1], index: 7, kind: output, shape index: {1}]  }
   0x1   :  { %14 = vsyncpa [#allocation6], 0 }
   0x2   :  { %15 = vsyncpa [#allocation9], 0 }
   0x3   :  { %16 = vsyncpa [#allocation4], 0  ;;  %s1155_s24 = smov [#allocation5]   ;;  %s1156_s26 = smov [#allocation2]  }
   0x4   :  { %s33_s25 = sshll.u32 %s1155_s24, 4  ;;  %s23_s27 = sshll.u32 %s1156_s26, 4  ;;  %s34_s25 = int_to_ptr.vmem [resolvable:$true] %s33_s25  ;;  %s24_s27 = int_to_ptr.vmem [resolvable:$true] %s23_s27 }
   0x5   :  { %s1055_s28 = scalar_lea.vmem %s34_s25, 128  ;;  %p1060_p1 = scmp.lt.s32.totalorder %s34_s25, %s34_s25 }
   0x6   :  { %p1056_p0 = scmp.ne.s32.totalorder %s34_s25, %s1055_s28  ;;  %p1061_p2 = scmp.lt.s32.totalorder %s1055_s28, %s1055_s28 }
   0x8   :  { %p1062_p3 = por %p1061_p2, %p1060_p1 }
   0xa   :  { %p1063_p4 = pnand %p1062_p3, %p1056_p0 }
   0xc   :  { %1066 = shalt.err (!%p1063_p4)
}
   0xd   :  { %36 = dma.hbm_to_vmem [thread:$0]  %s1393_s1, 128, %s34_s25, [#allocation6]  }
   0xe   :  { %s1075_s8 = scalar_lea.vmem %s24_s27, 128  ;;  %p1080_p6 = scmp.lt.s32.totalorder %s24_s27, %s24_s27 }
   0xf   :  { %p1076_p5 = scmp.ne.s32.totalorder %s24_s27, %s1075_s8  ;;  %p1081_p7 = scmp.lt.s32.totalorder %s1075_s8, %s1075_s8 }
  0x11   :  { %p1082_p8 = por %p1081_p7, %p1080_p6 }
  0x13   :  { %p1083_p9 = pnand %p1082_p8, %p1076_p5 }
  0x15   :  { %1086 = shalt.err (!%p1083_p9)
}
  0x16   :  { %26 = dma.hbm_to_vmem [thread:$0]  %s1392_s0, 128, %s24_s27, [#allocation3]  }
  0x17   :  { %s1157_s11 = smov [#allocation7]  }
  0x18   :  { %s42_s12 = sshll.u32 %s1157_s11, 4  ;;  %s43_s12 = int_to_ptr.vmem [resolvable:$true] %s42_s12 }
  0x19   :  { %s1095_s13 = scalar_lea.vmem %s43_s12, 256  ;;  %p1100_p11 = scmp.lt.s32.totalorder %s43_s12, %s43_s12 }
  0x1a   :  { %p1096_p10 = scmp.ne.s32.totalorder %s43_s12, %s1095_s13  ;;  %p1101_p12 = scmp.lt.s32.totalorder %s1095_s13, %s1095_s13 }
  0x1c   :  { %p1102_p13 = por %p1101_p12, %p1100_p11 }
  0x1e   :  { %p1103_p0 = pnand %p1102_p13, %p1096_p10 }
  0x20   :  { %1106 = shalt.err (!%p1103_p0)
}
  0x21   :  { %s1158_s1 = smov 128   ;;  %s1159_s14 = smov 8  }
  0x22   :  { %48 = dma.hbm_to_vmem [thread:$0]  %s1394_s2, 256, %s43_s12, [#allocation6], %s1158_s1, %s1158_s1, %s1159_s14  }
  0x23   :  { %s1160_s17 = smov [#allocation8]  }
  0x24   :  { %s56_s18 = sshll.u32 %s1160_s17, 4  ;;  %s57_s18 = int_to_ptr.vmem [resolvable:$true] %s56_s18 }
  0x25   :  { %s1115_s0 = scalar_lea.vmem %s57_s18, 512  ;;  %p1120_p2 = scmp.lt.s32.totalorder %s57_s18, %s57_s18 }
  0x26   :  { %p1116_p1 = scmp.ne.s32.totalorder %s57_s18, %s1115_s0  ;;  %p1121_p3 = scmp.lt.s32.totalorder %s1115_s0, %s1115_s0 }
  0x28   :  { %p1122_p4 = por %p1121_p3, %p1120_p2 }
  0x2a   :  { %p1123_p5 = pnand %p1122_p4, %p1116_p1 }
  0x2c   :  { %1126 = shalt.err (!%p1123_p5)
}
  0x2d   :  { %62 = dma.hbm_to_vmem [thread:$0]  %s1396_s4, 512, %s57_s18, [#allocation9], %s1158_s1, %s1158_s1, %s1159_s14  }
  0x2e   :  { %1147 = dma.done.wait [#allocation3], 128  }
  0x2f   :  { %1148 = vsyncadd [#allocation3], 4294967168 }
  0x30   :  { %1149 = dma.done.wait [#allocation6], 384  }
  0x31   :  { %1150 = vsyncadd [#allocation6], 4294966912 }
  0x32   :  { %1151 = dma.done.wait [#allocation9], 512  }
  0x33   :  { %1152 = vsyncadd [#allocation9], 4294966784  ;;  %v1161_v0 = vmov 0.0   ;;  %vm1162_vm0 = vmmov 0   ;;  %v1229_v1 = vld [vmem:[#allocation7 + $0x8] sm:$0xff]  ;;  %v1231_v2 = vld [vmem:[#allocation7] sm:$0xff] }
  0x34   :  { %935 = vmatprep.subr.mxu1 %v1161_v0  ;;  %939 = vmatprep.mubr.msk.f32.mxu1 %vm1162_vm0, %v1161_v0  ;;  %v1234_v3 = vld [vmem:[#allocation2] sm:$0xff]  ;;  %vm93_vm1 = vcmask 130048   ;;  %v1243_v4 = vld [vmem:[#allocation8 + $0x18] sm:$0xff]  ;;  %v1245_v5 = vld [vmem:[#allocation8 + $0x10] sm:$0xff]  ;;  %s1163_s2 = smov 96   ;;  %vm174_vm2 = vcmask 261120  }
  0x35   :  { %953 = vmatprep.subr.mxu0 %v1161_v0  ;;  %957 = vmatprep.mubr.msk.f32.mxu0 %vm1162_vm0, %v1161_v0  ;;  %v1249_v6 = vld [vmem:[#allocation8 + $0x8] sm:$0xff]  ;;  %v1253_v7 = vld [vmem:[#allocation8] sm:$0xff]  ;;  %s1164_s23 = smov 112   ;;  %s1166_s24 = smov 32   ;;  %vm858_vm3 = vcmask 392192   ;;  %vm860_vm4 = vcmask 523264  }
  0x36   :  { %936 = vmatpush3.msra.mxu1 %v1229_v1  ;;  %265 = vrot.lane.b32.xlu0 %v1229_v1, %s1163_s2  ;;  %v1266_v8 = vld [vmem:[%s1395_s3] ss:$0 sm:$0xff]  ;;  %v78_v22 = vld [vmem:[#allocation5] sm:$0xff]  ;;  %s1167_s25 = smov 80   ;;  %s1168_s26 = smov 16   ;;  %vm862_vm5 = vcmask 654336  }
  0x37   :  { %937 = vmatprep.subr.mxu1 %v1161_v0  ;;  %263 = vrot.lane.b32.xlu1 %v1231_v2, %s1163_s2  ;;  %v1283_v15 = vld [vmem:[%s1397_s5] ss:$0 sm:$0xff]  ;;  %s1165_s5 = smov 64   ;;  %s1169_s27 = smov 48   ;;  %vm864_vm6 = vcmask 785408   ;;  %vm866_vm7 = vcmask 916480  }
  0x38   :  { %938 = vmatpush3.msra.mxu1 %v1231_v2  ;;  %s1170_s28 = smov [#allocation10]  }
  0x39   :  { %940 = vmatmul.mubr.msk.f32.vlgmr.msra.gmra.mxu1 %vm93_vm1, %v1234_v3  ;;  %942 = vmatprep.subr.mxu1 %v1161_v0  ;;  %s877_s29 = sshll.u32 %s1170_s28, 4  ;;  %s878_s29 = int_to_ptr.vmem [resolvable:$true] %s877_s29 }
  0x3a   :  { %950 = vmatprep.mubr.msk.f32.mxu1 %vm1162_vm0, %v1161_v0  ;;  %943 = vmatpush3.msra.mxu1 %v1243_v4  ;;  %s1127_s30 = scalar_lea.vmem %s878_s29, 128  ;;  %p1132_p7 = scmp.lt.s32.totalorder %s878_s29, %s878_s29 }
  0x3b   :  { %944 = vmatprep.subr.mxu1 %v1161_v0  ;;  %269 = vrot.lane.b32.xlu1 %v1266_v8, %s1163_s2  ;;  %p1128_p6 = scmp.ne.s32.totalorder %s878_s29, %s1127_s30  ;;  %p1133_p8 = scmp.lt.s32.totalorder %s1127_s30, %s1127_s30 }
  0x3c   :  { %945 = vmatpush3.msra.mxu1 %v1245_v5 }
  0x3d   :  { %946 = vmatprep.subr.mxu1 %v1161_v0  ;;  %p1134_p9 = por %p1133_p8, %p1132_p7 }
  0x3e   :  { %947 = vmatpush3.msra.mxu1 %v1249_v6 }
  0x3f   :  { %948 = vmatprep.subr.mxu1 %v1161_v0  ;;  %354 = vrot.lane.b32.xlu1 %v1245_v5, %s1163_s2  ;;  %p1135_p10 = pnand %p1134_p9, %p1128_p6 }
  0x40   :  { %949 = vmatpush3.msra.mxu1 %v1253_v7 }
  0x41   :  { %971 = vmatprep.subr.mxu1 %v1161_v0 }
  0x43   :  { %350 = vrot.lane.b32.xlu1 %v1253_v7, %s1163_s2 }
  0x47   :  { %453 = vrot.lane.b32.xlu1 %v1229_v1, %s1165_s5 }
  0x4b   :  { %451 = vrot.lane.b32.xlu1 %v1231_v2, %s1165_s5 }
  0x4f   :  { %540 = vrot.lane.b32.xlu1 %v1243_v4, %s1165_s5 }
  0x53   :  { %536 = vrot.lane.b32.xlu1 %v1249_v6, %s1165_s5 }
  0x57   :  { %546 = vrot.lane.b32.xlu1 %v1283_v15, %s1165_s5 }
  0xa8   :  { %v266_v13 = vpop.permute.xlu0 %265 }
  0xa9   :  { %954 = vmatpush3.msra.mxu0 %v266_v13  ;;  %v264_v14 = vpop.permute.xlu1 %263 }
  0xaa   :  { %955 = vmatprep.subr.mxu0 %v1161_v0 }
  0xab   :  { %956 = vmatpush3.msra.mxu0 %v264_v14 }
  0xac   :  { %960 = vmatprep.subr.mxu0 %v1161_v0 }
  0xad   :  { %v270_v26 = vpop.permute.xlu1 %269 }
  0xb1   :  { %v355_v28 = vpop.permute.xlu1 %354 }
  0xb5   :  { %v351_v30 = vpop.permute.xlu1 %350 }
  0xb9   :  { %v454_v35 = vpop.permute.xlu1 %453 }
  0xbd   :  { %v452_v36 = vpop.permute.xlu1 %451 }
  0xc1   :  { %v541_v53 = vpop.permute.xlu1 %540 }
  0xc5   :  { %v537_v54 = vpop.permute.xlu1 %536 }
  0xc9   :  { %v547_v59 = vpop.permute.xlu1 %546 }
  0xf9   :  { %v163_v9 = vpop.f32.mrf.mxu1 }
  0xfa   :  { %v164_v10 = vadd.f32 %v1266_v8, %v163_v9 }
  0xfb   :  { %v941_v11 = vpop.f32.mrf.mxu1 }
  0xfc   :  { %1023 = vtanh.f32 %v164_v10 }
 0x109   :  { %v1024_v12 = vpop.eup %1023 }
 0x10a   :  { %951 = vmatmul.mubr.msk.f32.vlgmr.msra.gmra.mxu1 %vm174_vm2, %v1024_v12 }
 0x10b   :  { %975 = vmatprep.mubr.msk.f32.mxu1 %vm1162_vm0, %v1161_v0  ;;  %972 = vmatpush3.msra.mxu1 %v454_v35 }
 0x10c   :  { %973 = vmatprep.subr.mxu1 %v1161_v0 }
 0x10d   :  { %974 = vmatpush3.msra.mxu1 %v452_v36 }
 0x10e   :  { %978 = vmatprep.subr.mxu1 %v1161_v0 }
 0x1ca   :  { %v244_v16 = vpop.f32.mrf.mxu1 }
 0x1cb   :  { %v245_v17 = vadd.f32 %v1283_v15, %v244_v16 }
 0x1cc   :  { %v952_v18 = vpop.f32.mrf.mxu1 }
 0x1cd   :  { %253 = vrot.lane.b32.xlu0 %v245_v17, %s1164_s23  ;;  %1025 = vtanh.f32 %v245_v17 }
 0x1d1   :  { %356 = vrot.lane.b32.xlu0 %v1243_v4, %s1163_s2 }
 0x1d5   :  { %352 = vrot.lane.b32.xlu0 %v1249_v6, %s1163_s2 }
 0x1d9   :  { %362 = vrot.lane.b32.xlu0 %v1283_v15, %s1163_s2 }
 0x1da   :  { %v1026_v19 = vpop.eup %1025 }
 0x1db   :  { %v249_v20 = vmul.f32 1.442695, %v1026_v19  ;;  %v257_v41 = vsel %vm93_vm1, %v1026_v19, 0.0 }
 0x1dd   :  { %1027 = vpow2.f32 %v249_v20 }
 0x1ea   :  { %v1028_v21 = vpop.eup %1027 }
 0x1eb   :  { %v251_v23 = vmul.f32 %v1028_v21, %v78_v22 }
 0x23f   :  { %v254_v24 = vpop.permute.xlu0 %253 }
 0x240   :  { %v1293_v25 = vadd.f32 %v254_v24, %v251_v23 }
 0x242   :  { %958 = vmatmul.mubr.msk.f32.vlgmr.msra.gmra.mxu0 %vm93_vm1, %v1293_v25 }
 0x243   :  { %968 = vmatprep.mubr.msk.f32.mxu0 %vm1162_vm0, %v1161_v0  ;;  %v357_v27 = vpop.permute.xlu0 %356 }
 0x244   :  { %961 = vmatpush3.msra.mxu0 %v357_v27 }
 0x245   :  { %962 = vmatprep.subr.mxu0 %v1161_v0 }
 0x246   :  { %963 = vmatpush3.msra.mxu0 %v355_v28 }
 0x247   :  { %v353_v29 = vpop.permute.xlu0 %352  ;;  %964 = vmatprep.subr.mxu0 %v1161_v0 }
 0x248   :  { %965 = vmatpush3.msra.mxu0 %v353_v29 }
 0x249   :  { %966 = vmatprep.subr.mxu0 %v1161_v0 }
 0x24a   :  { %967 = vmatpush3.msra.mxu0 %v351_v30 }
 0x24b   :  { %989 = vmatprep.subr.mxu0 %v1161_v0  ;;  %v363_v37 = vpop.permute.xlu0 %362 }
 0x302   :  { %v341_v31 = vpop.f32.mrf.mxu0 }
 0x303   :  { %v342_v32 = vadd.f32 %v341_v31, %v270_v26 }
 0x304   :  { %v959_v33 = vpop.f32.mrf.mxu0 }
 0x305   :  { %1029 = vtanh.f32 %v342_v32 }
 0x312   :  { %v1030_v34 = vpop.eup %1029 }
 0x313   :  { %969 = vmatmul.mubr.msk.f32.vlgmr.msra.gmra.mxu0 %vm174_vm2, %v1030_v34 }
 0x314   :  { %993 = vmatprep.mubr.msk.f32.mxu0 %vm1162_vm0, %v1161_v0 }
 0x3d3   :  { %v434_v38 = vpop.f32.mrf.mxu0 }
 0x3d4   :  { %v435_v39 = vadd.f32 %v434_v38, %v363_v37 }
 0x3d5   :  { %v970_v40 = vpop.f32.mrf.mxu0 }
 0x3d6   :  { %443 = vrot.lane.b32.xlu0 %v435_v39, %s1164_s23  ;;  %1031 = vtanh.f32 %v435_v39 }
 0x3da   :  { %457 = vrot.lane.b32.xlu0 %v1266_v8, %s1165_s5 }
 0x3de   :  { %538 = vrot.lane.b32.xlu0 %v1245_v5, %s1165_s5 }
 0x3e2   :  { %534 = vrot.lane.b32.xlu0 %v1253_v7, %s1165_s5 }
 0x3e3   :  { %v1336_v42 = vpop.eup %1031 }
 0x3e4   :  { %v439_v43 = vmul.f32 1.442695, %v1336_v42 }
 0x3e6   :  { %637 = vrot.lane.b32.xlu0 %v1229_v1, %s1166_s24  ;;  %1033 = vpow2.f32 %v439_v43 }
 0x3ea   :  { %635 = vrot.lane.b32.xlu0 %v1231_v2, %s1166_s24 }
 0x3ee   :  { %724 = vrot.lane.b32.xlu0 %v1243_v4, %s1166_s24 }
 0x3f2   :  { %720 = vrot.lane.b32.xlu0 %v1249_v6, %s1166_s24 }
 0x3f3   :  { %v1034_v44 = vpop.eup %1033 }
 0x3f4   :  { %v441_v45 = vmul.f32 %v1034_v44, %v1234_v3 }
 0x3f6   :  { %730 = vrot.lane.b32.xlu0 %v1283_v15, %s1166_s24 }
 0x415   :  { %258 = vadd.xlane.f32.xlu0 %v257_v41 }
 0x448   :  { %v444_v46 = vpop.permute.xlu0 %443 }
 0x449   :  { %v1340_v47 = vadd.f32 %v444_v46, %v441_v45 }
 0x44b   :  { %976 = vmatmul.mubr.msk.f32.vlgmr.msra.gmra.mxu1 %vm93_vm1, %v1340_v47 }
 0x44c   :  { %v458_v48 = vpop.permute.xlu0 %457  ;;  %986 = vmatprep.mubr.msk.f32.mxu1 %vm1162_vm0, %v1161_v0  ;;  %979 = vmatpush3.msra.mxu1 %v541_v53 }
 0x44d   :  { %980 = vmatprep.subr.mxu1 %v1161_v0 }
 0x450   :  { %v539_v49 = vpop.permute.xlu0 %538 }
 0x451   :  { %981 = vmatpush3.msra.mxu1 %v539_v49 }
 0x452   :  { %982 = vmatprep.subr.mxu1 %v1161_v0 }
 0x453   :  { %983 = vmatpush3.msra.mxu1 %v537_v54 }
 0x454   :  { %v535_v50 = vpop.permute.xlu0 %534  ;;  %984 = vmatprep.subr.mxu1 %v1161_v0 }
 0x455   :  { %985 = vmatpush3.msra.mxu1 %v535_v50 }
 0x458   :  { %v638_v51 = vpop.permute.xlu0 %637 }
 0x459   :  { %990 = vmatpush3.msra.mxu0 %v638_v51 }
 0x45a   :  { %991 = vmatprep.subr.mxu0 %v1161_v0 }
 0x45c   :  { %v636_v52 = vpop.permute.xlu0 %635 }
 0x45d   :  { %992 = vmatpush3.msra.mxu0 %v636_v52 }
 0x45e   :  { %996 = vmatprep.subr.mxu0 %v1161_v0 }
 0x460   :  { %v725_v11 = vpop.permute.xlu0 %724 }
 0x464   :  { %v721_v13 = vpop.permute.xlu0 %720 }
 0x468   :  { %v731_v19 = vpop.permute.xlu0 %730 }
 0x49e   :  { %v259_v33 = vpop.xlane.xlu0 %258 }
 0x50b   :  { %v529_v55 = vpop.f32.mrf.mxu1 }
 0x50c   :  { %v530_v56 = vadd.f32 %v529_v55, %v458_v48 }
 0x50d   :  { %v977_v57 = vpop.f32.mrf.mxu1 }
 0x50e   :  { %1035 = vtanh.f32 %v530_v56 }
 0x51b   :  { %v1036_v58 = vpop.eup %1035 }
 0x51c   :  { %987 = vmatmul.mubr.msk.f32.vlgmr.msra.gmra.mxu1 %vm174_vm2, %v1036_v58 }
 0x5dc   :  { %v618_v60 = vpop.f32.mrf.mxu1 }
 0x5dd   :  { %v619_v61 = vadd.f32 %v618_v60, %v547_v59 }
 0x5de   :  { %v988_v62 = vpop.f32.mrf.mxu1 }
 0x5df   :  { %1037 = vtanh.f32 %v619_v61  ;;  %627 = vrot.lane.b32.xlu1 %v619_v61, %s1164_s23 }
 0x5e3   :  { %641 = vrot.lane.b32.xlu1 %v1266_v8, %s1166_s24 }
 0x5e7   :  { %722 = vrot.lane.b32.xlu1 %v1245_v5, %s1166_s24 }
 0x5eb   :  { %718 = vrot.lane.b32.xlu1 %v1253_v7, %s1166_s24 }
 0x5ec   :  { %v1038_v63 = vpop.eup %1037 }
 0x5ed   :  { %v631_v1 = vsel %vm93_vm1, %v1038_v63, 0.0  ;;  %v623_v2 = vmul.f32 1.442695, %v1038_v63 }
 0x5ee   :  { %632 = vadd.xlane.f32.xlu0 %v631_v1 }
 0x5ef   :  { %1039 = vpow2.f32 %v623_v2 }
 0x5fc   :  { %v1040_v4 = vpop.eup %1039 }
 0x5fd   :  { %v625_v6 = vmul.f32 %v1040_v4, %v1293_v25 }
 0x651   :  { %v628_v9 = vpop.permute.xlu1 %627 }
 0x652   :  { %v630_v10 = vadd.f32 %v628_v9, %v625_v6 }
 0x654   :  { %994 = vmatmul.mubr.msk.f32.vlgmr.msra.gmra.mxu0 %vm93_vm1, %v630_v10  ;;  %v823_v8 = vmul.f32 %v630_v10, %v630_v10 }
 0x655   :  { %997 = vmatpush3.msra.mxu0 %v725_v11  ;;  %1004 = vmatprep.mubr.msk.f32.mxu0 %vm1162_vm0, %v1161_v0  ;;  %v642_v7 = vpop.permute.xlu1 %641 }
 0x656   :  { %v824_v5 = vsel %vm93_vm1, %v823_v8, 0.0  ;;  %998 = vmatprep.subr.mxu0 %v1161_v0 }
 0x657   :  { %825 = vadd.xlane.f32.xlu0 %v824_v5 }
 0x659   :  { %v723_v12 = vpop.permute.xlu1 %722 }
 0x65a   :  { %999 = vmatpush3.msra.mxu0 %v723_v12 }
 0x65b   :  { %1000 = vmatprep.subr.mxu0 %v1161_v0 }
 0x65c   :  { %1001 = vmatpush3.msra.mxu0 %v721_v13 }
 0x65d   :  { %v719_v14 = vpop.permute.xlu1 %718  ;;  %1002 = vmatprep.subr.mxu0 %v1161_v0  ;;  %v447_v0 = vsel %vm93_vm1, %v1336_v42, 0.0 }
 0x65e   :  { %1003 = vmatpush3.msra.mxu0 %v719_v14 }
 0x66d   :  { %837 = vrot.lane.b32.xlu0 %v1340_v47, %s1166_s24 }
 0x671   :  { %846 = vrot.lane.b32.xlu0 %v630_v10, %s1167_s25 }
 0x677   :  { %v633_v35 = vpop.xlane.xlu0 %632 }
 0x714   :  { %v713_v15 = vpop.f32.mrf.mxu0 }
 0x715   :  { %v714_v16 = vadd.f32 %v713_v15, %v642_v7 }
 0x716   :  { %v995_v17 = vpop.f32.mrf.mxu0 }
 0x717   :  { %1041 = vtanh.f32 %v714_v16 }
 0x724   :  { %v1042_v18 = vpop.eup %1041 }
 0x725   :  { %1005 = vmatmul.mubr.msk.f32.vlgmr.msra.gmra.mxu0 %vm174_vm2, %v1042_v18 }
 0x7e5   :  { %v802_v20 = vpop.f32.mrf.mxu0 }
 0x7e6   :  { %v803_v21 = vadd.f32 %v802_v20, %v731_v19 }
 0x7e7   :  { %v1006_v22 = vpop.f32.mrf.mxu0 }
 0x7e8   :  { %1043 = vtanh.f32 %v803_v21  ;;  %811 = vrot.lane.b32.xlu1 %v803_v21, %s1164_s23 }
 0x7f5   :  { %v1044_v23 = vpop.eup %1043 }
 0x7f6   :  { %v815_v24 = vsel %vm93_vm1, %v1044_v23, 0.0  ;;  %v807_v26 = vmul.f32 1.442695, %v1044_v23 }
 0x7f7   :  { %816 = vadd.xlane.f32.xlu0 %v815_v24 }
 0x7f8   :  { %1045 = vpow2.f32 %v807_v26 }
 0x805   :  { %v1046_v27 = vpop.eup %1045 }
 0x806   :  { %v809_v28 = vmul.f32 %v1046_v27, %v1340_v47 }
 0x80c   :  { %448 = vadd.xlane.f32.xlu1 %v447_v0 }
 0x80d   :  { %853 = vrot.lane.b32.xlu0 %v630_v10, %s1164_s23 }
 0x81d   :  { %834 = vrot.lane.b32.xlu1 %v1293_v25, %s1168_s26 }
 0x821   :  { %840 = vrot.lane.b32.xlu1 %v1293_v25, %s1169_s27  ;;  %v826_v25 = vpop.xlane.xlu0 %825 }
 0x825   :  { %843 = vrot.lane.b32.xlu1 %v1340_v47, %s1165_s5  ;;  %v838_v37 = vpop.permute.xlu0 %837 }
 0x829   :  { %v847_v39 = vpop.permute.xlu0 %846 }
 0x85a   :  { %v812_v29 = vpop.permute.xlu1 %811 }
 0x85b   :  { %v814_v30 = vadd.f32 %v812_v29, %v809_v28 }
 0x85d   :  { %v819_v31 = vmul.f32 %v814_v30, %v814_v30 }
 0x85f   :  { %v820_v32 = vsel %vm93_vm1, %v819_v31, 0.0 }
 0x860   :  { %821 = vadd.xlane.f32.xlu1 %v820_v32 }
 0x871   :  { %850 = vrot.lane.b32.xlu1 %v814_v30, %s1163_s2 }
 0x880   :  { %v817_v43 = vpop.xlane.xlu0 %816 }
 0x884   :  { %v854_v52 = vpop.permute.xlu0 %853 }
 0x895   :  { %v449_v34 = vpop.xlane.xlu1 %448 }
 0x896   :  { %v450_v42 = vadd.f32 %v449_v34, %v259_v33 }
 0x898   :  { %v634_v47 = vadd.f32 %v633_v35, %v450_v42 }
 0x899   :  { %v835_v36 = vpop.permute.xlu1 %834 }
 0x89a   :  { %v856_v40 = vsel %vm93_vm1, %v1234_v3, %v835_v36  ;;  %v818_v53 = vadd.f32 %v817_v43, %v634_v47 }
 0x89b   :  { %v857_v44 = vsel %vm174_vm2, %v856_v40, %v838_v37 }
 0x89d   :  { %v841_v38 = vpop.permute.xlu1 %840 }
 0x89e   :  { %v859_v45 = vsel %vm858_vm3, %v857_v44, %v841_v38 }
 0x8a1   :  { %v844_v41 = vpop.permute.xlu1 %843 }
 0x8a2   :  { %v861_v48 = vsel %vm860_vm4, %v859_v45, %v844_v41 }
 0x8a3   :  { %v863_v51 = vsel %vm862_vm5, %v861_v48, %v847_v39 }
 0x8e9   :  { %v822_v46 = vpop.xlane.xlu1 %821 }
 0x8ea   :  { %v827_v49 = vadd.f32 %v826_v25, %v822_v46 }
 0x8ec   :  { %v828_v50 = vmul.f32 -0.5, %v827_v49 }
 0x8ed   :  { %v851_v3 = vpop.permute.xlu1 %850 }
 0x8ee   :  { %v902_v54 = vadd.f32 -29.406033, %v828_v50  ;;  %v865_v55 = vsel %vm864_vm6, %v863_v51, %v851_v3 }
 0x8ef   :  { %v867_v56 = vsel %vm866_vm7, %v865_v55, %v854_v52 }
 0x8f0   :  { %v830_v57 = vadd.f32 %v902_v54, %v818_v53  ;;  %868 = vst [vmem:[#allocation10] sm:$0xff] %v867_v56 }
 0x8f1   :  { %1138 = shalt.err (!%p1135_p10)
}
 0x8f2   :  { %880 = dma.vmem_to_hbm [thread:$0]  %s878_s29, 128, %s1398_s6, [#allocation4]   ;;  %v831_v58 = vsub.f32 0.0, %v830_v57  ;;  %vm869_vm8 = vcmask 7168  }
 0x8f4   :  { %v833_v59 = vmul.f32 0.04508422, %v831_v58 }
 0x8f6   :  { %870 = vst.msk [vmem:[%s1399_s7] sm:$0xff] %vm869_vm8, %v833_v59 }
 0x8f7   :  { %1153 = dma.done.wait [#allocation4], 128  }
 0x8f8   :  { %1154 = vsyncadd [#allocation4], 4294967168 }
 0x8f9   :  { %888 = vsyncpa [#allocation3], 1 }
 0x8fa   :  { %889 = vsyncpa [#allocation6], 1 }
 0x8fb   :  { %890 = vsyncpa [#allocation9], 1 }
 0x8fc   :  { %891 = vsyncpa [#allocation4], 1 }

</bundles_post_ra>
